<compile_context>
chip_gen: v7x
topology: tpu7x:2x2x1
jax: 0.10.0
libtpu: 0.0.40
codegen_flags: <defaults>
</compile_context>

<pallas_src>
import functools

import jax
import jax.numpy as jnp
from jax.experimental import pallas as pl
from jax.experimental.pallas import tpu as pltpu

_LANE = 128      # vreg lane width
_SUBLANE = 8     # vreg sublane count


def _round_up(n, m):
    return ((n + m - 1) // m) * m


# --------------------------------------------------------------------------- #
# Kernel
# --------------------------------------------------------------------------- #
def _mlp_kernel(*refs, use_dropout: bool):
    """One batch tile through all 5 layers.

    refs (inputs then output):
      x, (w1,b1)...(w5,b5), [m1..m4 if use_dropout], out
    x / weights are bf16; biases and masks are f32; out is f32.
    """
    if use_dropout:
        (x_ref,
         w1_ref, b1_ref, w2_ref, b2_ref, w3_ref, b3_ref,
         w4_ref, b4_ref, w5_ref, b5_ref,
         m1_ref, m2_ref, m3_ref, m4_ref,
         o_ref) = refs
        m_refs = (m1_ref, m2_ref, m3_ref, m4_ref)
    else:
        (x_ref,
         w1_ref, b1_ref, w2_ref, b2_ref, w3_ref, b3_ref,
         w4_ref, b4_ref, w5_ref, b5_ref,
         o_ref) = refs
        m_refs = (None, None, None, None)

    def linear(h_bf16, w_ref, b_ref):
        # bf16 x bf16 on the MXU, f32 accumulate; bias add in f32.
        acc = jnp.dot(h_bf16, w_ref[...], preferred_element_type=jnp.float32)
        return acc + b_ref[...]

    def lrelu(h):  # LeakyReLU(0.2)
        return jnp.where(h > 0, h, 0.2 * h)

    h = x_ref[...]  # (TB, in_pad) bf16
    hidden = ((w1_ref, b1_ref), (w2_ref, b2_ref),
              (w3_ref, b3_ref), (w4_ref, b4_ref))
    for (w_ref, b_ref), m_ref in zip(hidden, m_refs):
        a = lrelu(linear(h, w_ref, b_ref))        # f32
        if use_dropout:
            a = a * m_ref[...]                    # scaled keep-mask (f32)
        h = a.astype(jnp.bfloat16)                # back to bf16 for next MXU pass

    h5 = linear(h, w5_ref, b5_ref)                # fc5, f32
    o_ref[...] = jnp.maximum(h5, 0.0).astype(o_ref.dtype)   # final ReLU


# --------------------------------------------------------------------------- #
# Wrapper
# --------------------------------------------------------------------------- #
def mlp_4hl_dropout_r(x, params, *, drop_rate=0.5, training=False, rng_key=None):
    """x: (B, res_size) f32.  params: w1..w5 as (in, out), b1..b5 as (1, out)."""
    B, d_in = x.shape
    dims_in = [params[f"w{i}"].shape[0] for i in range(1, 6)]
    dims_out = [params[f"w{i}"].shape[1] for i in range(1, 6)]
    att_size = dims_out[-1]

    # Pad every feature dim to a multiple of 128 (lane-dense MXU / stores).
    in_pad = [_round_up(d, _LANE) for d in dims_in]
    out_pad = [_round_up(d, _LANE) for d in dims_out]

    # Batch tile: big enough to feed the MXU at large B, sublane-aligned at
    # small B.  Padded rows are zero and sliced off at the end.
    if B >= 256:
        TB = 256
    elif B >= 128:
        TB = 128
    else:
        TB = _round_up(B, _SUBLANE)
    B_pad = _round_up(B, TB)

    # ---- pad + cast inputs -------------------------------------------------
    x_p = jnp.zeros((B_pad, in_pad[0]), jnp.bfloat16)
    x_p = x_p.at[:B, :d_in].set(x.astype(jnp.bfloat16))

    ws, bs = [], []
    for i in range(1, 6):
        w = params[f"w{i}"]
        b = params[f"b{i}"].reshape(1, -1)
        wp = jnp.zeros((in_pad[i - 1], out_pad[i - 1]), jnp.bfloat16)
        wp = wp.at[:w.shape[0], :w.shape[1]].set(w.astype(jnp.bfloat16))
        bp = jnp.zeros((1, out_pad[i - 1]), jnp.float32)
        bp = bp.at[:, :b.shape[1]].set(b.astype(jnp.float32))
        ws.append(wp)
        bs.append(bp)

    # ---- dropout masks (training only): scaled inverted-dropout multipliers -
    use_dropout = bool(training) and float(drop_rate) > 0.0
    masks = []
    if use_dropout:
        if rng_key is None:
            rng_key = jax.random.PRNGKey(0)
        keep_p = max(0.0, 1.0 - float(drop_rate))
        scale = (1.0 / keep_p) if keep_p > 0.0 else 0.0
        mkeys = jax.random.split(rng_key, 4)
        for li in range(4):
            keep = jax.random.bernoulli(mkeys[li], p=keep_p,
                                        shape=(B_pad, out_pad[li]))
            masks.append(keep.astype(jnp.float32) * jnp.float32(scale))

    # ---- grid + specs -------------------------------------------------------
    grid = (B_pad // TB,)

    def row_tile(width):   # batch-tiled arrays (x, masks, out)
        return pl.BlockSpec((TB, width), lambda i: (i, 0))

    def resident(shape):   # weights/biases: same block every step -> VMEM-resident
        return pl.BlockSpec(shape, lambda i: (0, 0))

    in_specs = [row_tile(in_pad[0])]
    args = [x_p]
    for i in range(5):
        in_specs += [resident(ws[i].shape), resident(bs[i].shape)]
        args += [ws[i], bs[i]]
    if use_dropout:
        for li in range(4):
            in_specs.append(row_tile(out_pad[li]))
            args.append(masks[li])

    out_spec = row_tile(out_pad[-1])
    out_shape = jax.ShapeDtypeStruct((B_pad, out_pad[-1]), jnp.float32)

    # ---- cost estimate + VMEM budget ---------------------------------------
    flops = 2 * B_pad * sum(ip * op for ip, op in zip(in_pad, out_pad))
    bytes_accessed = (x_p.size * 2
                      + sum(w.size for w in ws) * 2
                      + sum(b.size for b in bs) * 4
                      + sum(m.size for m in masks) * 4
                      + B_pad * out_pad[-1] * 4)
    cost = pl.CostEstimate(flops=flops, transcendentals=0,
                           bytes_accessed=bytes_accessed)

    resident_bytes = sum(w.size for w in ws) * 2 + sum(b.size for b in bs) * 4
    per_step_bytes = (TB * in_pad[0] * 2 + TB * out_pad[-1] * 4
                      + (sum(TB * out_pad[li] * 4 for li in range(4))
                         if use_dropout else 0))
    needed = resident_bytes + 2 * per_step_bytes + (2 << 20)
    # Keep the budget explicit; cap at 64 MiB so the same layout fits v7x.
    vmem_limit = int(min(64 << 20, max(32 << 20, 2 * needed)))

    kernel = functools.partial(_mlp_kernel, use_dropout=use_dropout)

    out = pl.pallas_call(
        kernel,
        grid=grid,
        in_specs=in_specs,
        out_specs=out_spec,
        out_shape=out_shape,
        compiler_params=pltpu.CompilerParams(
            dimension_semantics=("parallel",),   # batch tiles are independent
            vmem_limit_bytes=vmem_limit),
        cost_estimate=cost,
    )(*args)

    return out[:B, :att_size]


# --------------------------------------------------------------------------- #
# Init + reference
# --------------------------------------------------------------------------- #
def init_params(key, res_size, hl1, hl2, hl3, hl4, att_size):
    """weights_init: W ~ N(0, 0.02), b = 0.  W stored as (in, out)."""
    dims = [(res_size, hl1), (hl1, hl2), (hl2, hl3), (hl3, hl4), (hl4, att_size)]
    params = {}
    keys = jax.random.split(key, len(dims))
    for i, ((d_in, d_out), k) in enumerate(zip(dims, keys), start=1):
        params[f"w{i}"] = 0.02 * jax.random.normal(k, (d_in, d_out), jnp.float32)
        params[f"b{i}"] = jnp.zeros((1, d_out), jnp.float32)
    return params


def _reference_eval_bf16(x, params):
    """Pure-JAX eval-mode reference mirroring the kernel's bf16/f32 mixed path."""
    h = x.astype(jnp.bfloat16)
    for i in range(1, 5):
        a = jnp.dot(h, params[f"w{i}"].astype(jnp.bfloat16),
                    preferred_element_type=jnp.float32) + params[f"b{i}"]
        a = jnp.where(a > 0, a, 0.2 * a)
        h = a.astype(jnp.bfloat16)
    h5 = jnp.dot(h, params["w5"].astype(jnp.bfloat16),
                 preferred_element_type=jnp.float32) + params["b5"]
    return jnp.maximum(h5, 0.0)


# --------------------------------------------------------------------------- #
# Demo / self-test
# --------------------------------------------------------------------------- #
if __name__ == "__main__":
    B = 8
    res_size, hl1, hl2, hl3, hl4, att_size = 64, 64, 64, 32, 32, 16
    drop_rate = 0.5

    key = jax.random.PRNGKey(0)
    kx, kp, kd = jax.random.split(key, 3)
    x = jax.random.normal(kx, (B, res_size), jnp.float32)
    params = init_params(kp, res_size, hl1, hl2, hl3, hl4, att_size)

    # Eval mode (dropout = identity, PyTorch semantics): compare to reference.
    out_eval = mlp_4hl_dropout_r(x, params, drop_rate=drop_rate, training=False)
    out_eval = jax.block_until_ready(out_eval)
    ref = _reference_eval_bf16(x, params)
    assert out_eval.shape == (B, att_size)
    assert jnp.allclose(out_eval, ref, atol=1e-2, rtol=1e-2), \
        float(jnp.max(jnp.abs(out_eval - ref)))

    # Training mode: dropout masks active (cannot match PyTorch RNG bit-for-bit).
    out_train = mlp_4hl_dropout_r(x, params, drop_rate=drop_rate,
                                  training=True, rng_key=kd)
    out_train = jax.block_until_ready(out_train)
    assert out_train.shape == (B, att_size)
    assert bool(jnp.all(out_train >= 0.0))  # final ReLU
    assert bool(jnp.all(jnp.isfinite(out_train)))

    print("KERNEL_OK")
</pallas_src>

<mosaic_0001>
module attributes {stable_mosaic.version = 11 : i64} {
  func.func @_mlp_kernel(%arg0: i32, %arg1: memref<8x128xbf16, #tpu.memory_space<vmem>>, %arg2: memref<128x128xbf16, #tpu.memory_space<vmem>>, %arg3: memref<1x128xf32, #tpu.memory_space<vmem>>, %arg4: memref<128x128xbf16, #tpu.memory_space<vmem>>, %arg5: memref<1x128xf32, #tpu.memory_space<vmem>>, %arg6: memref<128x128xbf16, #tpu.memory_space<vmem>>, %arg7: memref<1x128xf32, #tpu.memory_space<vmem>>, %arg8: memref<128x128xbf16, #tpu.memory_space<vmem>>, %arg9: memref<1x128xf32, #tpu.memory_space<vmem>>, %arg10: memref<128x128xbf16, #tpu.memory_space<vmem>>, %arg11: memref<1x128xf32, #tpu.memory_space<vmem>>, %arg12: memref<8x128xf32, #tpu.memory_space<vmem>>) attributes {dimension_semantics = [#tpu.dimension_semantics<parallel>], iteration_bounds = array<i64: 1>, scalar_prefetch = 0 : i64, scratch_operands = 0 : i64, tpu.core_type = #tpu.core_type<tc>, window_params = [{transform_indices = @transform_0, window_bounds = array<i64: 8, 128>}, {pipeline_mode = #tpu.pipeline_mode<synchronous>, transform_indices = @transform_1, window_bounds = array<i64: 128, 128>}, {pipeline_mode = #tpu.pipeline_mode<synchronous>, transform_indices = @transform_2, window_bounds = array<i64: 1, 128>}, {pipeline_mode = #tpu.pipeline_mode<synchronous>, transform_indices = @transform_3, window_bounds = array<i64: 128, 128>}, {pipeline_mode = #tpu.pipeline_mode<synchronous>, transform_indices = @transform_4, window_bounds = array<i64: 1, 128>}, {pipeline_mode = #tpu.pipeline_mode<synchronous>, transform_indices = @transform_5, window_bounds = array<i64: 128, 128>}, {pipeline_mode = #tpu.pipeline_mode<synchronous>, transform_indices = @transform_6, window_bounds = array<i64: 1, 128>}, {pipeline_mode = #tpu.pipeline_mode<synchronous>, transform_indices = @transform_7, window_bounds = array<i64: 128, 128>}, {pipeline_mode = #tpu.pipeline_mode<synchronous>, transform_indices = @transform_8, window_bounds = array<i64: 1, 128>}, {pipeline_mode = #tpu.pipeline_mode<synchronous>, transform_indices = @transform_9, window_bounds = array<i64: 128, 128>}, {pipeline_mode = #tpu.pipeline_mode<synchronous>, transform_indices = @transform_10, window_bounds = array<i64: 1, 128>}, {transform_indices = @transform_11, window_bounds = array<i64: 8, 128>}]} {
    %c0 = arith.constant 0 : index
    %c0_0 = arith.constant 0 : index
    %0 = vector.load %arg1[%c0, %c0_0] : memref<8x128xbf16, #tpu.memory_space<vmem>>, vector<8x128xbf16>
    %c0_1 = arith.constant 0 : index
    %c0_2 = arith.constant 0 : index
    %1 = vector.load %arg2[%c0_1, %c0_2] : memref<128x128xbf16, #tpu.memory_space<vmem>>, vector<128x128xbf16>
    %cst = arith.constant dense<0.000000e+00> : vector<8x128xf32>
    %2 = tpu.matmul %0, %1, %cst {dimension_numbers = #tpu.dot_dimension_numbers<[1], [0], [0], [1], [0, 0, 1, 1], [], []>} : vector<8x128xbf16>, vector<128x128xbf16>, vector<8x128xf32> -> vector<8x128xf32>
    %c0_3 = arith.constant 0 : index
    %c0_4 = arith.constant 0 : index
    %3 = vector.load %arg3[%c0_3, %c0_4] : memref<1x128xf32, #tpu.memory_space<vmem>>, vector<1x128xf32>
    %4 = vector.broadcast %3 : vector<1x128xf32> to vector<8x128xf32>
    %5 = arith.addf %2, %4 : vector<8x128xf32>
    %cst_5 = arith.constant 0.000000e+00 : f32
    %6 = vector.broadcast %cst_5 : f32 to vector<8x128xf32>
    %7 = arith.cmpf ogt, %5, %6 : vector<8x128xf32>
    %cst_6 = arith.constant 2.000000e-01 : f32
    %8 = vector.broadcast %cst_6 : f32 to vector<8x128xf32>
    %9 = arith.mulf %8, %5 : vector<8x128xf32>
    %10 = arith.select %7, %5, %9 : vector<8x128xi1>, vector<8x128xf32>
    %11 = arith.truncf %10 : vector<8x128xf32> to vector<8x128xbf16>
    %c0_7 = arith.constant 0 : index
    %c0_8 = arith.constant 0 : index
    %12 = vector.load %arg4[%c0_7, %c0_8] : memref<128x128xbf16, #tpu.memory_space<vmem>>, vector<128x128xbf16>
    %cst_9 = arith.constant dense<0.000000e+00> : vector<8x128xf32>
    %13 = tpu.matmul %11, %12, %cst_9 {dimension_numbers = #tpu.dot_dimension_numbers<[1], [0], [0], [1], [0, 0, 1, 1], [], []>} : vector<8x128xbf16>, vector<128x128xbf16>, vector<8x128xf32> -> vector<8x128xf32>
    %c0_10 = arith.constant 0 : index
    %c0_11 = arith.constant 0 : index
    %14 = vector.load %arg5[%c0_10, %c0_11] : memref<1x128xf32, #tpu.memory_space<vmem>>, vector<1x128xf32>
    %15 = vector.broadcast %14 : vector<1x128xf32> to vector<8x128xf32>
    %16 = arith.addf %13, %15 : vector<8x128xf32>
    %cst_12 = arith.constant 0.000000e+00 : f32
    %17 = vector.broadcast %cst_12 : f32 to vector<8x128xf32>
    %18 = arith.cmpf ogt, %16, %17 : vector<8x128xf32>
    %cst_13 = arith.constant 2.000000e-01 : f32
    %19 = vector.broadcast %cst_13 : f32 to vector<8x128xf32>
    %20 = arith.mulf %19, %16 : vector<8x128xf32>
    %21 = arith.select %18, %16, %20 : vector<8x128xi1>, vector<8x128xf32>
    %22 = arith.truncf %21 : vector<8x128xf32> to vector<8x128xbf16>
    %c0_14 = arith.constant 0 : index
    %c0_15 = arith.constant 0 : index
    %23 = vector.load %arg6[%c0_14, %c0_15] : memref<128x128xbf16, #tpu.memory_space<vmem>>, vector<128x128xbf16>
    %cst_16 = arith.constant dense<0.000000e+00> : vector<8x128xf32>
    %24 = tpu.matmul %22, %23, %cst_16 {dimension_numbers = #tpu.dot_dimension_numbers<[1], [0], [0], [1], [0, 0, 1, 1], [], []>} : vector<8x128xbf16>, vector<128x128xbf16>, vector<8x128xf32> -> vector<8x128xf32>
    %c0_17 = arith.constant 0 : index
    %c0_18 = arith.constant 0 : index
    %25 = vector.load %arg7[%c0_17, %c0_18] : memref<1x128xf32, #tpu.memory_space<vmem>>, vector<1x128xf32>
    %26 = vector.broadcast %25 : vector<1x128xf32> to vector<8x128xf32>
    %27 = arith.addf %24, %26 : vector<8x128xf32>
    %cst_19 = arith.constant 0.000000e+00 : f32
    %28 = vector.broadcast %cst_19 : f32 to vector<8x128xf32>
    %29 = arith.cmpf ogt, %27, %28 : vector<8x128xf32>
    %cst_20 = arith.constant 2.000000e-01 : f32
    %30 = vector.broadcast %cst_20 : f32 to vector<8x128xf32>
    %31 = arith.mulf %30, %27 : vector<8x128xf32>
    %32 = arith.select %29, %27, %31 : vector<8x128xi1>, vector<8x128xf32>
    %33 = arith.truncf %32 : vector<8x128xf32> to vector<8x128xbf16>
    %c0_21 = arith.constant 0 : index
    %c0_22 = arith.constant 0 : index
    %34 = vector.load %arg8[%c0_21, %c0_22] : memref<128x128xbf16, #tpu.memory_space<vmem>>, vector<128x128xbf16>
    %cst_23 = arith.constant dense<0.000000e+00> : vector<8x128xf32>
    %35 = tpu.matmul %33, %34, %cst_23 {dimension_numbers = #tpu.dot_dimension_numbers<[1], [0], [0], [1], [0, 0, 1, 1], [], []>} : vector<8x128xbf16>, vector<128x128xbf16>, vector<8x128xf32> -> vector<8x128xf32>
    %c0_24 = arith.constant 0 : index
    %c0_25 = arith.constant 0 : index
    %36 = vector.load %arg9[%c0_24, %c0_25] : memref<1x128xf32, #tpu.memory_space<vmem>>, vector<1x128xf32>
    %37 = vector.broadcast %36 : vector<1x128xf32> to vector<8x128xf32>
    %38 = arith.addf %35, %37 : vector<8x128xf32>
    %cst_26 = arith.constant 0.000000e+00 : f32
    %39 = vector.broadcast %cst_26 : f32 to vector<8x128xf32>
    %40 = arith.cmpf ogt, %38, %39 : vector<8x128xf32>
    %cst_27 = arith.constant 2.000000e-01 : f32
    %41 = vector.broadcast %cst_27 : f32 to vector<8x128xf32>
    %42 = arith.mulf %41, %38 : vector<8x128xf32>
    %43 = arith.select %40, %38, %42 : vector<8x128xi1>, vector<8x128xf32>
    %44 = arith.truncf %43 : vector<8x128xf32> to vector<8x128xbf16>
    %c0_28 = arith.constant 0 : index
    %c0_29 = arith.constant 0 : index
    %45 = vector.load %arg10[%c0_28, %c0_29] : memref<128x128xbf16, #tpu.memory_space<vmem>>, vector<128x128xbf16>
    %cst_30 = arith.constant dense<0.000000e+00> : vector<8x128xf32>
    %46 = tpu.matmul %44, %45, %cst_30 {dimension_numbers = #tpu.dot_dimension_numbers<[1], [0], [0], [1], [0, 0, 1, 1], [], []>} : vector<8x128xbf16>, vector<128x128xbf16>, vector<8x128xf32> -> vector<8x128xf32>
    %c0_31 = arith.constant 0 : index
    %c0_32 = arith.constant 0 : index
    %47 = vector.load %arg11[%c0_31, %c0_32] : memref<1x128xf32, #tpu.memory_space<vmem>>, vector<1x128xf32>
    %48 = vector.broadcast %47 : vector<1x128xf32> to vector<8x128xf32>
    %49 = arith.addf %46, %48 : vector<8x128xf32>
    %cst_33 = arith.constant 0.000000e+00 : f32
    %50 = vector.broadcast %cst_33 : f32 to vector<8x128xf32>
    %51 = arith.maximumf %49, %50 : vector<8x128xf32>
    %c0_34 = arith.constant 0 : index
    %c0_35 = arith.constant 0 : index
    %52 = vector.load %arg12[%c0_34, %c0_35] : memref<8x128xf32, #tpu.memory_space<vmem>>, vector<8x128xf32>
    tpu.vector_store %arg12[%c0_34, %c0_35], %51 {strides = array<i32>} : memref<8x128xf32, #tpu.memory_space<vmem>>, vector<8x128xf32>,
    return
  }
  func.func @transform_0(%arg0: i32) -> (i32, i32) {
    %c0_i32 = arith.constant 0 : i32
    %c0_i32_0 = arith.constant 0 : i32
    return %arg0, %c0_i32 : i32, i32
  }
  func.func @transform_1(%arg0: i32) -> (i32, i32) {
    %c0_i32 = arith.constant 0 : i32
    %c0_i32_0 = arith.constant 0 : i32
    %c0_i32_1 = arith.constant 0 : i32
    return %c0_i32, %c0_i32_0 : i32, i32
  }
  func.func @transform_2(%arg0: i32) -> (i32, i32) {
    %c0_i32 = arith.constant 0 : i32
    %c0_i32_0 = arith.constant 0 : i32
    %c0_i32_1 = arith.constant 0 : i32
    return %c0_i32, %c0_i32_0 : i32, i32
  }
  func.func @transform_3(%arg0: i32) -> (i32, i32) {
    %c0_i32 = arith.constant 0 : i32
    %c0_i32_0 = arith.constant 0 : i32
    %c0_i32_1 = arith.constant 0 : i32
    return %c0_i32, %c0_i32_0 : i32, i32
  }
  func.func @transform_4(%arg0: i32) -> (i32, i32) {
    %c0_i32 = arith.constant 0 : i32
    %c0_i32_0 = arith.constant 0 : i32
    %c0_i32_1 = arith.constant 0 : i32
    return %c0_i32, %c0_i32_0 : i32, i32
  }
  func.func @transform_5(%arg0: i32) -> (i32, i32) {
    %c0_i32 = arith.constant 0 : i32
    %c0_i32_0 = arith.constant 0 : i32
    %c0_i32_1 = arith.constant 0 : i32
    return %c0_i32, %c0_i32_0 : i32, i32
  }
  func.func @transform_6(%arg0: i32) -> (i32, i32) {
    %c0_i32 = arith.constant 0 : i32
    %c0_i32_0 = arith.constant 0 : i32
    %c0_i32_1 = arith.constant 0 : i32
    return %c0_i32, %c0_i32_0 : i32, i32
  }
  func.func @transform_7(%arg0: i32) -> (i32, i32) {
    %c0_i32 = arith.constant 0 : i32
    %c0_i32_0 = arith.constant 0 : i32
    %c0_i32_1 = arith.constant 0 : i32
    return %c0_i32, %c0_i32_0 : i32, i32
  }
  func.func @transform_8(%arg0: i32) -> (i32, i32) {
    %c0_i32 = arith.constant 0 : i32
    %c0_i32_0 = arith.constant 0 : i32
    %c0_i32_1 = arith.constant 0 : i32
    return %c0_i32, %c0_i32_0 : i32, i32
  }
  func.func @transform_9(%arg0: i32) -> (i32, i32) {
    %c0_i32 = arith.constant 0 : i32
    %c0_i32_0 = arith.constant 0 : i32
    %c0_i32_1 = arith.constant 0 : i32
    return %c0_i32, %c0_i32_0 : i32, i32
  }
  func.func @transform_10(%arg0: i32) -> (i32, i32) {
    %c0_i32 = arith.constant 0 : i32
    %c0_i32_0 = arith.constant 0 : i32
    %c0_i32_1 = arith.constant 0 : i32
    return %c0_i32, %c0_i32_0 : i32, i32
  }
  func.func @transform_11(%arg0: i32) -> (i32, i32) {
    %c0_i32 = arith.constant 0 : i32
    %c0_i32_0 = arith.constant 0 : i32
    return %arg0, %c0_i32 : i32, i32
  }
}

</mosaic_0001>

<bundles_post_ra>
// kernel: tpu_custom_call.1
= control target key start
LH: loop header
LB: loop body
LE: loop exit
PB: predicated region body
PF: predicated region fallthrough
CT: control target
= control target key end

     0   :  { %16 = vsyncpa [#allocation3], 0  ;;  %s1352_s0 = inlined_call_operand.hbm [shape: bf16[8,128], index: 0, kind: input, shape index: {}]   ;;  %s1353_s1 = inlined_call_operand.hbm [shape: bf16[128,128], index: 1, kind: input, shape index: {}]   ;;  %s1354_s2 = inlined_call_operand.vmem [shape: f32[1,128], index: 2, kind: input, shape index: {}]   ;;  %s1355_s3 = inlined_call_operand.hbm [shape: bf16[128,128], index: 3, kind: input, shape index: {}]   ;;  %s1356_s4 = inlined_call_operand.vmem [shape: f32[1,128], index: 4, kind: input, shape index: {}]   ;;  %s1357_s5 = inlined_call_operand.hbm [shape: bf16[128,128], index: 5, kind: input, shape index: {}]   ;;  %s1358_s6 = inlined_call_operand.vmem [shape: f32[1,128], index: 6, kind: input, shape index: {}]   ;;  %s1359_s7 = inlined_call_operand.hbm [shape: bf16[128,128], index: 7, kind: input, shape index: {}]   ;;  %s1360_s8 = inlined_call_operand.vmem [shape: f32[1,128], index: 8, kind: input, shape index: {}]   ;;  %s1361_s9 = inlined_call_operand.hbm [shape: bf16[128,128], index: 9, kind: input, shape index: {}]   ;;  %s1362_s10 = inlined_call_operand.vmem [shape: f32[1,128], index: 10, kind: input, shape index: {}]   ;;  %s1363_s11 = inlined_call_operand.hbm [shape: f32[8,128], index: 11, kind: output, shape index: {}]  }
   0x1   :  { %17 = vsyncpa [#allocation6], 0 }
   0x2   :  { %18 = vsyncpa [#allocation9], 0 }
   0x3   :  { %19 = vsyncpa [#allocation12], 0 }
   0x4   :  { %20 = vsyncpa [#allocation4], 0  ;;  %s1117_s17 = smov [#allocation5]   ;;  %s953_s21 = scalar_lea.hbm %s1353_s1, 1024 }
   0x5   :  { %s36_s18 = sshll.u32 %s1117_s17, 4  ;;  %p954_p0 = scmp.ne.s32.totalorder %s1353_s1, %s953_s21  ;;  %s37_s18 = int_to_ptr.vmem [resolvable:$true] %s36_s18 }
   0x6   :  { %p957_p1 = scmp.lt.u32.totalorder %s953_s21, %s1353_s1 }
   0x8   :  { %p959_p2 = pnand %p957_p1, %p954_p0 }
   0xa   :  { %962 = shalt.err (!%p959_p2)
}
   0xb   :  { %s963_s26 = scalar_lea.vmem %s37_s18, 1024  ;;  %p968_p4 = scmp.lt.s32.totalorder %s37_s18, %s37_s18 }
   0xc   :  { %p964_p3 = scmp.ne.s32.totalorder %s37_s18, %s963_s26  ;;  %p969_p5 = scmp.lt.s32.totalorder %s963_s26, %s963_s26 }
   0xe   :  { %p970_p6 = por %p969_p5, %p968_p4 }
  0x10   :  { %p971_p7 = pnand %p970_p6, %p964_p3 }
  0x12   :  { %974 = shalt.err (!%p971_p7)
}
  0x13   :  { %s1118_s27 = smov 64   ;;  %s1119_s28 = smov 4  }
  0x14   :  { %42 = dma.hbm_to_vmem [thread:$0]  %s1353_s1, 1024, %s37_s18, [#allocation6], %s1118_s27, %s1118_s27, %s1119_s28  }
  0x15   :  { %s1120_s12 = smov [#allocation8]   ;;  %s1121_s14 = smov [#allocation2]  }
  0x16   :  { %s64_s13 = sshll.u32 %s1120_s12, 4  ;;  %s27_s15 = sshll.u32 %s1121_s14, 4  ;;  %s65_s13 = int_to_ptr.vmem [resolvable:$true] %s64_s13  ;;  %s28_s15 = int_to_ptr.vmem [resolvable:$true] %s27_s15 }
  0x17   :  { %s975_s19 = scalar_lea.hbm %s1357_s5, 1024 }
  0x18   :  { %p976_p8 = scmp.ne.s32.totalorder %s1357_s5, %s975_s19  ;;  %p979_p9 = scmp.lt.u32.totalorder %s975_s19, %s1357_s5 }
  0x1a   :  { %p981_p10 = pnand %p979_p9, %p976_p8 }
  0x1c   :  { %984 = shalt.err (!%p981_p10)
}
  0x1d   :  { %s985_s1 = scalar_lea.vmem %s65_s13, 1024  ;;  %p990_p12 = scmp.lt.s32.totalorder %s65_s13, %s65_s13 }
  0x1e   :  { %p986_p11 = scmp.ne.s32.totalorder %s65_s13, %s985_s1  ;;  %p991_p13 = scmp.lt.s32.totalorder %s985_s1, %s985_s1 }
  0x20   :  { %p992_p0 = por %p991_p13, %p990_p12 }
  0x22   :  { %p993_p1 = pnand %p992_p0, %p986_p11 }
  0x24   :  { %996 = shalt.err (!%p993_p1)
}
  0x25   :  { %70 = dma.hbm_to_vmem [thread:$0]  %s1357_s5, 1024, %s65_s13, [#allocation9], %s1118_s27, %s1118_s27, %s1119_s28  }
  0x26   :  { %s997_s29 = scalar_lea.hbm %s1352_s0, 64 }
  0x27   :  { %p998_p2 = scmp.ne.s32.totalorder %s1352_s0, %s997_s29  ;;  %p1001_p3 = scmp.lt.u32.totalorder %s997_s29, %s1352_s0 }
  0x29   :  { %p1003_p4 = pnand %p1001_p3, %p998_p2 }
  0x2b   :  { %1006 = shalt.err (!%p1003_p4)
}
  0x2c   :  { %s1007_s17 = scalar_lea.vmem %s28_s15, 64  ;;  %p1012_p6 = scmp.lt.s32.totalorder %s28_s15, %s28_s15 }
  0x2d   :  { %p1008_p5 = scmp.ne.s32.totalorder %s28_s15, %s1007_s17  ;;  %p1013_p7 = scmp.lt.s32.totalorder %s1007_s17, %s1007_s17 }
  0x2f   :  { %p1014_p8 = por %p1013_p7, %p1012_p6 }
  0x31   :  { %p1015_p9 = pnand %p1014_p8, %p1008_p5 }
  0x33   :  { %1018 = shalt.err (!%p1015_p9)
}
  0x34   :  { %30 = dma.hbm_to_vmem [thread:$0]  %s1352_s0, 64, %s28_s15, [#allocation3]  }
  0x35   :  { %s1122_s19 = smov [#allocation7]   ;;  %s1123_s21 = smov [#allocation10]  }
  0x36   :  { %s50_s20 = sshll.u32 %s1122_s19, 4  ;;  %s78_s22 = sshll.u32 %s1123_s21, 4  ;;  %s51_s20 = int_to_ptr.vmem [resolvable:$true] %s50_s20  ;;  %s79_s22 = int_to_ptr.vmem [resolvable:$true] %s78_s22 }
  0x37   :  { %s1019_s18 = scalar_lea.hbm %s1355_s3, 1024 }
  0x38   :  { %p1020_p10 = scmp.ne.s32.totalorder %s1355_s3, %s1019_s18  ;;  %p1023_p11 = scmp.lt.u32.totalorder %s1019_s18, %s1355_s3 }
  0x3a   :  { %p1025_p12 = pnand %p1023_p11, %p1020_p10 }
  0x3c   :  { %1028 = shalt.err (!%p1025_p12)
}
  0x3d   :  { %s1029_s0 = scalar_lea.vmem %s51_s20, 1024  ;;  %p1034_p0 = scmp.lt.s32.totalorder %s51_s20, %s51_s20 }
  0x3e   :  { %p1030_p13 = scmp.ne.s32.totalorder %s51_s20, %s1029_s0  ;;  %p1035_p1 = scmp.lt.s32.totalorder %s1029_s0, %s1029_s0 }
  0x40   :  { %p1036_p2 = por %p1035_p1, %p1034_p0 }
  0x42   :  { %p1037_p3 = pnand %p1036_p2, %p1030_p13 }
  0x44   :  { %1040 = shalt.err (!%p1037_p3)
}
  0x45   :  { %56 = dma.hbm_to_vmem [thread:$0]  %s1355_s3, 1024, %s51_s20, [#allocation6], %s1118_s27, %s1118_s27, %s1119_s28  }
  0x46   :  { %s1041_s16 = scalar_lea.hbm %s1359_s7, 1024 }
  0x47   :  { %p1042_p4 = scmp.ne.s32.totalorder %s1359_s7, %s1041_s16  ;;  %p1045_p5 = scmp.lt.u32.totalorder %s1041_s16, %s1359_s7 }
  0x49   :  { %p1047_p6 = pnand %p1045_p5, %p1042_p4 }
  0x4b   :  { %1050 = shalt.err (!%p1047_p6)
}
  0x4c   :  { %s1051_s21 = scalar_lea.vmem %s79_s22, 1024  ;;  %p1056_p8 = scmp.lt.s32.totalorder %s79_s22, %s79_s22 }
  0x4d   :  { %p1052_p7 = scmp.ne.s32.totalorder %s79_s22, %s1051_s21  ;;  %p1057_p9 = scmp.lt.s32.totalorder %s1051_s21, %s1051_s21 }
  0x4f   :  { %p1058_p10 = por %p1057_p9, %p1056_p8 }
  0x51   :  { %p1059_p11 = pnand %p1058_p10, %p1052_p7 }
  0x53   :  { %1062 = shalt.err (!%p1059_p11)
}
  0x54   :  { %84 = dma.hbm_to_vmem [thread:$0]  %s1359_s7, 1024, %s79_s22, [#allocation9], %s1118_s27, %s1118_s27, %s1119_s28  }
  0x55   :  { %s1124_s23 = smov [#allocation11]   ;;  %s1063_s25 = scalar_lea.hbm %s1361_s9, 1024 }
  0x56   :  { %s92_s1 = sshll.u32 %s1124_s23, 4  ;;  %p1064_p12 = scmp.ne.s32.totalorder %s1361_s9, %s1063_s25  ;;  %s93_s1 = int_to_ptr.vmem [resolvable:$true] %s92_s1 }
  0x57   :  { %p1067_p13 = scmp.lt.u32.totalorder %s1063_s25, %s1361_s9 }
  0x59   :  { %p1069_p0 = pnand %p1067_p13, %p1064_p12 }
  0x5b   :  { %1072 = shalt.err (!%p1069_p0)
}
  0x5c   :  { %s1073_s30 = scalar_lea.vmem %s93_s1, 1024  ;;  %p1078_p2 = scmp.lt.s32.totalorder %s93_s1, %s93_s1 }
  0x5d   :  { %p1074_p1 = scmp.ne.s32.totalorder %s93_s1, %s1073_s30  ;;  %p1079_p3 = scmp.lt.s32.totalorder %s1073_s30, %s1073_s30 }
  0x5f   :  { %p1080_p4 = por %p1079_p3, %p1078_p2 }
  0x61   :  { %p1081_p5 = pnand %p1080_p4, %p1074_p1 }
  0x63   :  { %1084 = shalt.err (!%p1081_p5)
}
  0x64   :  { %98 = dma.hbm_to_vmem [thread:$0]  %s1361_s9, 1024, %s93_s1, [#allocation12], %s1118_s27, %s1118_s27, %s1119_s28  }
  0x65   :  { %1107 = dma.done.wait [#allocation3], 64  }
  0x66   :  { %1108 = vsyncadd [#allocation3], 4294967232 }
  0x67   :  { %1109 = dma.done.wait [#allocation6], 2048  }
  0x68   :  { %1110 = vsyncadd [#allocation6], 4294965248 }
  0x69   :  { %1111 = dma.done.wait [#allocation9], 2048  }
  0x6a   :  { %1112 = vsyncadd [#allocation9], 4294965248 }
  0x6b   :  { %1113 = dma.done.wait [#allocation12], 1024  }
  0x6c   :  { %1114 = vsyncadd [#allocation12], 4294966272  ;;  %v1125_v0 = vmov 0.0   ;;  %vm1126_vm0 = vmmov 0   ;;  %v913_v1 = vld [vmem:[#allocation5] sm:$0xff]   ;;  %v914_v2 = vld [vmem:[#allocation5 + $0x8] sm:$0xff]  }
  0x6d   :  { %802 = vmatprep.subr.bf16.mxu0 %v1125_v0  ;;  %818 = vmatprep.mubr.msk.bf16.mxu0 %vm1126_vm0, %v1125_v0  ;;  %v915_v3 = vld [vmem:[#allocation5 + $0x10] sm:$0xff]   ;;  %v921_v4 = vld [vmem:[#allocation7] sm:$0xff]   ;;  %v916_v5 = vld [vmem:[#allocation5 + $0x18] sm:$0xff]   ;;  %s1127_s5 = smov [#allocation13]  }
  0x6e   :  { %822 = vmatprep.subr.bf16.mxu1 %v1125_v0  ;;  %838 = vmatprep.mubr.msk.bf16.mxu1 %vm1126_vm0, %v1125_v0  ;;  %v922_v6 = vld [vmem:[#allocation7 + $0x8] sm:$0xff]   ;;  %v917_v7 = vld [vmem:[#allocation5 + $0x20] sm:$0xff]   ;;  %v923_v8 = vld [vmem:[#allocation7 + $0x10] sm:$0xff]   ;;  %s700_s13 = sshll.u32 %s1127_s5, 4  ;;  %s701_s13 = int_to_ptr.vmem [resolvable:$true] %s700_s13 }
  0x6f   :  { %803 = vmatpush3.bf16.msra.mxu0 %v913_v1  ;;  %823 = vmatpush3.bf16.msra.mxu1 %v921_v4  ;;  %v918_v9 = vld [vmem:[#allocation5 + $0x28] sm:$0xff]   ;;  %v924_v10 = vld [vmem:[#allocation7 + $0x18] sm:$0xff]   ;;  %v919_v11 = vld [vmem:[#allocation5 + $0x30] sm:$0xff]   ;;  %p1090_p7 = scmp.lt.s32.totalorder %s701_s13, %s701_s13 }
  0x70   :  { %804 = vmatprep.subr.bf16.mxu0 %v1125_v0  ;;  %824 = vmatprep.subr.bf16.mxu1 %v1125_v0  ;;  %v925_v12 = vld [vmem:[#allocation7 + $0x20] sm:$0xff]   ;;  %v920_v13 = vld [vmem:[#allocation5 + $0x38] sm:$0xff]   ;;  %v926_v14 = vld [vmem:[#allocation7 + $0x28] sm:$0xff]  }
  0x71   :  { %v120_v15 = vld [vmem:[#allocation2] sm:$0xf]  ;;  %v927_v16 = vld [vmem:[#allocation7 + $0x30] sm:$0xff]   ;;  %v929_v18 = vld [vmem:[#allocation8] sm:$0xff]  }
  0x72   :  { %v928_v17 = vld [vmem:[#allocation7 + $0x38] sm:$0xff]   ;;  %v930_v19 = vld [vmem:[#allocation8 + $0x8] sm:$0xff]   ;;  %v931_v20 = vld [vmem:[#allocation8 + $0x10] sm:$0xff]  }
  0x73   :  { %805 = vmatpush3.bf16.msra.mxu0 %v914_v2  ;;  %825 = vmatpush3.bf16.msra.mxu1 %v922_v6  ;;  %v932_v21 = vld [vmem:[#allocation8 + $0x18] sm:$0xff]   ;;  %v933_v22 = vld [vmem:[#allocation8 + $0x20] sm:$0xff]   ;;  %v934_v23 = vld [vmem:[#allocation8 + $0x28] sm:$0xff]  }
  0x74   :  { %806 = vmatprep.subr.bf16.mxu0 %v1125_v0  ;;  %826 = vmatprep.subr.bf16.mxu1 %v1125_v0  ;;  %v712_v24 = vld [vmem:[%s1354_s2] ss:$0 sm:$0xff]  ;;  %v935_v33 = vld [vmem:[#allocation8 + $0x30] sm:$0xff]   ;;  %v937_v35 = vld [vmem:[#allocation10] sm:$0xff]  }
  0x75   :  { %v936_v34 = vld [vmem:[#allocation8 + $0x38] sm:$0xff]   ;;  %v938_v36 = vld [vmem:[#allocation10 + $0x8] sm:$0xff]   ;;  %v939_v37 = vld [vmem:[#allocation10 + $0x10] sm:$0xff]  }
  0x76   :  { %v940_v38 = vld [vmem:[#allocation10 + $0x18] sm:$0xff]   ;;  %v941_v39 = vld [vmem:[#allocation10 + $0x20] sm:$0xff]   ;;  %v942_v40 = vld [vmem:[#allocation10 + $0x28] sm:$0xff]  }
  0x77   :  { %807 = vmatpush3.bf16.msra.mxu0 %v915_v3  ;;  %827 = vmatpush3.bf16.msra.mxu1 %v923_v8  ;;  %v721_v41 = vld [vmem:[%s1356_s4] ss:$0 sm:$0xff]  ;;  %v943_v50 = vld [vmem:[#allocation10 + $0x30] sm:$0xff]   ;;  %v945_v52 = vld [vmem:[#allocation11] sm:$0xff]  }
  0x78   :  { %808 = vmatprep.subr.bf16.mxu0 %v1125_v0  ;;  %828 = vmatprep.subr.bf16.mxu1 %v1125_v0  ;;  %v944_v51 = vld [vmem:[#allocation10 + $0x38] sm:$0xff]   ;;  %v946_v53 = vld [vmem:[#allocation11 + $0x8] sm:$0xff]   ;;  %v947_v54 = vld [vmem:[#allocation11 + $0x10] sm:$0xff]  }
  0x79   :  { %v948_v55 = vld [vmem:[#allocation11 + $0x18] sm:$0xff]   ;;  %v949_v56 = vld [vmem:[#allocation11 + $0x20] sm:$0xff]   ;;  %v950_v57 = vld [vmem:[#allocation11 + $0x28] sm:$0xff]  }
  0x7a   :  { %v730_v58 = vld [vmem:[%s1358_s6] ss:$0 sm:$0xff]  ;;  %v951_v4 = vld [vmem:[#allocation11 + $0x30] sm:$0xff]  }
  0x7b   :  { %809 = vmatpush3.bf16.msra.mxu0 %v916_v5  ;;  %829 = vmatpush3.bf16.msra.mxu1 %v924_v10  ;;  %v952_v5 = vld [vmem:[#allocation11 + $0x38] sm:$0xff]  }
  0x7c   :  { %810 = vmatprep.subr.bf16.mxu0 %v1125_v0  ;;  %830 = vmatprep.subr.bf16.mxu1 %v1125_v0  ;;  %v739_v6 = vld [vmem:[%s1360_s8] ss:$0 sm:$0xff]  ;;  %s1085_s8 = scalar_lea.vmem %s701_s13, 128 }
  0x7d   :  { %p1086_p6 = scmp.ne.s32.totalorder %s701_s13, %s1085_s8  ;;  %p1091_p8 = scmp.lt.s32.totalorder %s1085_s8, %s1085_s8 }
  0x7f   :  { %811 = vmatpush3.bf16.msra.mxu0 %v917_v7  ;;  %831 = vmatpush3.bf16.msra.mxu1 %v925_v12  ;;  %p1092_p9 = por %p1091_p8, %p1090_p7 }
  0x80   :  { %812 = vmatprep.subr.bf16.mxu0 %v1125_v0  ;;  %832 = vmatprep.subr.bf16.mxu1 %v1125_v0 }
  0x81   :  { %p1093_p10 = pnand %p1092_p9, %p1086_p6 }
  0x83   :  { %813 = vmatpush3.bf16.msra.mxu0 %v918_v9  ;;  %833 = vmatpush3.bf16.msra.mxu1 %v926_v14 }
  0x84   :  { %814 = vmatprep.subr.bf16.mxu0 %v1125_v0  ;;  %834 = vmatprep.subr.bf16.mxu1 %v1125_v0 }
  0x87   :  { %815 = vmatpush3.bf16.msra.mxu0 %v919_v11  ;;  %835 = vmatpush3.bf16.msra.mxu1 %v927_v16 }
  0x88   :  { %816 = vmatprep.subr.bf16.mxu0 %v1125_v0  ;;  %836 = vmatprep.subr.bf16.mxu1 %v1125_v0 }
  0x8b   :  { %817 = vmatpush3.bf16.msra.mxu0 %v920_v13  ;;  %837 = vmatpush3.bf16.msra.mxu1 %v928_v17 }
  0x8c   :  { %842 = vmatprep.subr.bf16.mxu0 %v1125_v0  ;;  %862 = vmatprep.subr.bf16.mxu1 %v1125_v0 }
  0x8e   :  { %819 = vmatmul.mubr.bf16.vlgmr.msra.gmra.mrb[0].mxu0 %v120_v15 }
  0x8f   :  { %858 = vmatprep.mubr.msk.bf16.mxu0 %vm1126_vm0, %v1125_v0  ;;  %843 = vmatpush3.bf16.msra.mxu0 %v929_v18 }
  0x90   :  { %844 = vmatprep.subr.bf16.mxu0 %v1125_v0 }
  0x93   :  { %845 = vmatpush3.bf16.msra.mxu0 %v930_v19 }
  0x94   :  { %846 = vmatprep.subr.bf16.mxu0 %v1125_v0 }
  0x97   :  { %847 = vmatpush3.bf16.msra.mxu0 %v931_v20 }
  0x98   :  { %848 = vmatprep.subr.bf16.mxu0 %v1125_v0 }
  0x9b   :  { %849 = vmatpush3.bf16.msra.mxu0 %v932_v21 }
  0x9c   :  { %850 = vmatprep.subr.bf16.mxu0 %v1125_v0 }
  0x9f   :  { %851 = vmatpush3.bf16.msra.mxu0 %v933_v22 }
  0xa0   :  { %852 = vmatprep.subr.bf16.mxu0 %v1125_v0 }
  0xa3   :  { %853 = vmatpush3.bf16.msra.mxu0 %v934_v23 }
  0xa4   :  { %854 = vmatprep.subr.bf16.mxu0 %v1125_v0 }
  0xa7   :  { %855 = vmatpush3.bf16.msra.mxu0 %v935_v33 }
  0xa8   :  { %856 = vmatprep.subr.bf16.mxu0 %v1125_v0 }
  0xab   :  { %857 = vmatpush3.bf16.msra.mxu0 %v936_v34 }
  0xac   :  { %882 = vmatprep.subr.bf16.mxu0 %v1125_v0 }
 0x161   :  { %v226_v25 = vpop.f32.mrb[0].mxu0 }
 0x162   :  { %v227_v26 = vadd.f32 %v712_v24, %v226_v25  ;;  %v820_v27 = vpop.f32.mrb[1].mxu0 }
 0x163   :  { %v229_v28 = vpop.f32.mrb[2].mxu0 }
 0x164   :  { %vm232_vm1 = vcmp.gt.f32.partialorder %v227_v26, 0.0  ;;  %v233_v29 = vmul.f32 0.2, %v227_v26  ;;  %v821_v30 = vpop.f32.mrb[3].mxu0 }
 0x166   :  { %v234_v31 = vsel %vm232_vm1, %v227_v26, %v233_v29 }
 0x167   :  { %v235_v32 = vpack.c.bf16 %v234_v31, %v234_v31 }
 0x169   :  { %839 = vmatmul.mubr.bf16.vlgmr.msra.gmra.mrb[0].mxu1 %v235_v32 }
 0x16a   :  { %878 = vmatprep.mubr.msk.bf16.mxu1 %vm1126_vm0, %v1125_v0  ;;  %863 = vmatpush3.bf16.msra.mxu1 %v937_v35 }
 0x16b   :  { %864 = vmatprep.subr.bf16.mxu1 %v1125_v0 }
 0x16e   :  { %865 = vmatpush3.bf16.msra.mxu1 %v938_v36 }
 0x16f   :  { %866 = vmatprep.subr.bf16.mxu1 %v1125_v0 }
 0x172   :  { %867 = vmatpush3.bf16.msra.mxu1 %v939_v37 }
 0x173   :  { %868 = vmatprep.subr.bf16.mxu1 %v1125_v0 }
 0x176   :  { %869 = vmatpush3.bf16.msra.mxu1 %v940_v38 }
 0x177   :  { %870 = vmatprep.subr.bf16.mxu1 %v1125_v0 }
 0x17a   :  { %871 = vmatpush3.bf16.msra.mxu1 %v941_v39 }
 0x17b   :  { %872 = vmatprep.subr.bf16.mxu1 %v1125_v0 }
 0x17e   :  { %873 = vmatpush3.bf16.msra.mxu1 %v942_v40 }
 0x17f   :  { %874 = vmatprep.subr.bf16.mxu1 %v1125_v0 }
 0x182   :  { %875 = vmatpush3.bf16.msra.mxu1 %v943_v50 }
 0x183   :  { %876 = vmatprep.subr.bf16.mxu1 %v1125_v0 }
 0x186   :  { %877 = vmatpush3.bf16.msra.mxu1 %v944_v51 }
 0x23c   :  { %v341_v42 = vpop.f32.mrb[0].mxu1 }
 0x23d   :  { %v342_v43 = vadd.f32 %v721_v41, %v341_v42  ;;  %v840_v44 = vpop.f32.mrb[1].mxu1 }
 0x23e   :  { %v344_v45 = vpop.f32.mrb[2].mxu1 }
 0x23f   :  { %vm347_vm2 = vcmp.gt.f32.partialorder %v342_v43, 0.0  ;;  %v348_v46 = vmul.f32 0.2, %v342_v43  ;;  %v841_v47 = vpop.f32.mrb[3].mxu1 }
 0x241   :  { %v349_v48 = vsel %vm347_vm2, %v342_v43, %v348_v46 }
 0x242   :  { %v350_v49 = vpack.c.bf16 %v349_v48, %v349_v48 }
 0x244   :  { %859 = vmatmul.mubr.bf16.vlgmr.msra.gmra.mrb[4].mxu0 %v350_v49 }
 0x245   :  { %898 = vmatprep.mubr.msk.bf16.mxu0 %vm1126_vm0, %v1125_v0  ;;  %883 = vmatpush3.bf16.msra.mxu0 %v945_v52 }
 0x246   :  { %884 = vmatprep.subr.bf16.mxu0 %v1125_v0 }
 0x249   :  { %885 = vmatpush3.bf16.msra.mxu0 %v946_v53 }
 0x24a   :  { %886 = vmatprep.subr.bf16.mxu0 %v1125_v0 }
 0x24d   :  { %887 = vmatpush3.bf16.msra.mxu0 %v947_v54 }
 0x24e   :  { %888 = vmatprep.subr.bf16.mxu0 %v1125_v0 }
 0x251   :  { %889 = vmatpush3.bf16.msra.mxu0 %v948_v55 }
 0x252   :  { %890 = vmatprep.subr.bf16.mxu0 %v1125_v0 }
 0x255   :  { %891 = vmatpush3.bf16.msra.mxu0 %v949_v56 }
 0x256   :  { %892 = vmatprep.subr.bf16.mxu0 %v1125_v0 }
 0x259   :  { %893 = vmatpush3.bf16.msra.mxu0 %v950_v57 }
 0x25a   :  { %894 = vmatprep.subr.bf16.mxu0 %v1125_v0 }
 0x25d   :  { %895 = vmatpush3.bf16.msra.mxu0 %v951_v4 }
 0x25e   :  { %896 = vmatprep.subr.bf16.mxu0 %v1125_v0  ;;  %v748_v0 = vld [vmem:[%s1362_s10] ss:$0 sm:$0xff] }
 0x261   :  { %897 = vmatpush3.bf16.msra.mxu0 %v952_v5 }
 0x317   :  { %v456_v59 = vpop.f32.mrb[4].mxu0 }
 0x318   :  { %v457_v60 = vadd.f32 %v730_v58, %v456_v59  ;;  %v860_v61 = vpop.f32.mrb[5].mxu0 }
 0x319   :  { %v459_v62 = vpop.f32.mrb[6].mxu0 }
 0x31a   :  { %vm462_vm3 = vcmp.gt.f32.partialorder %v457_v60, 0.0  ;;  %v463_v63 = vmul.f32 0.2, %v457_v60  ;;  %v861_v1 = vpop.f32.mrb[7].mxu0 }
 0x31c   :  { %v464_v2 = vsel %vm462_vm3, %v457_v60, %v463_v63 }
 0x31d   :  { %v465_v3 = vpack.c.bf16 %v464_v2, %v464_v2 }
 0x31f   :  { %879 = vmatmul.mubr.bf16.vlgmr.msra.gmra.mrb[4].mxu1 %v465_v3 }
 0x3f2   :  { %v571_v7 = vpop.f32.mrb[4].mxu1 }
 0x3f3   :  { %v572_v8 = vadd.f32 %v739_v6, %v571_v7  ;;  %v880_v9 = vpop.f32.mrb[5].mxu1 }
 0x3f4   :  { %v574_v10 = vpop.f32.mrb[6].mxu1 }
 0x3f5   :  { %vm577_vm4 = vcmp.gt.f32.partialorder %v572_v8, 0.0  ;;  %v578_v11 = vmul.f32 0.2, %v572_v8  ;;  %v881_v12 = vpop.f32.mrb[7].mxu1 }
 0x3f7   :  { %v579_v13 = vsel %vm577_vm4, %v572_v8, %v578_v11 }
 0x3f8   :  { %v580_v14 = vpack.c.bf16 %v579_v13, %v579_v13 }
 0x3fa   :  { %899 = vmatmul.mubr.bf16.vlgmr.msra.gmra.mrb[8].mxu0 %v580_v14 }
 0x4cd   :  { %v686_v15 = vpop.f32.mrb[8].mxu0 }
 0x4ce   :  { %v687_v16 = vadd.f32 %v748_v0, %v686_v15  ;;  %v900_v17 = vpop.f32.mrb[9].mxu0 }
 0x4cf   :  { %v689_v18 = vpop.f32.mrb[10].mxu0 }
 0x4d0   :  { %v692_v19 = vmax.f32 %v687_v16, 0.0  ;;  %v901_v20 = vpop.f32.mrb[11].mxu0 }
 0x4d2   :  { %693 = vst [vmem:[#allocation13] sm:$0xff] %v692_v19 }
 0x4d3   :  { %1096 = shalt.err (!%p1093_p10)
}
 0x4d4   :  { %s1097_s10 = scalar_lea.hbm %s1363_s11, 128 }
 0x4d5   :  { %p1098_p11 = scmp.ne.s32.totalorder %s1363_s11, %s1097_s10  ;;  %p1101_p12 = scmp.lt.u32.totalorder %s1097_s10, %s1363_s11 }
 0x4d7   :  { %p1103_p13 = pnand %p1101_p12, %p1098_p11 }
 0x4d9   :  { %1106 = shalt.err (!%p1103_p13)
}
 0x4da   :  { %703 = dma.vmem_to_hbm [thread:$0]  %s701_s13, 128, %s1363_s11, [#allocation4]  }
 0x4db   :  { %1115 = dma.done.wait [#allocation4], 128  }
 0x4dc   :  { %1116 = vsyncadd [#allocation4], 4294967168 }
 0x4dd   :  { %707 = vsyncpa [#allocation3], 1 }
 0x4de   :  { %708 = vsyncpa [#allocation6], 1 }
 0x4df   :  { %709 = vsyncpa [#allocation9], 1 }
 0x4e0   :  { %710 = vsyncpa [#allocation12], 1 }
 0x4e1   :  { %711 = vsyncpa [#allocation4], 1 }

</bundles_post_ra>
